<compile_context>
chip_gen: v7x
topology: tpu7x:2x2x1
jax: 0.10.0
libtpu: 0.0.40
codegen_flags: <defaults>
</compile_context>

<pallas_src>
import functools

import jax
import jax.numpy as jnp
from jax.experimental import pallas as pl
from jax.experimental.pallas import tpu as pltpu

K_FACTORS = 5
M_USERS = 6
N_ITEMS = 5

# Default batch tile: 8 sublanes x 1024 lanes = 8192 elements per grid step.
# Big enough to amortize the ~0.35us per-step pipeline overhead (per review:
# 128-wide tiles only reach ~29% of HBM roofline), small enough that large
# batches still yield >=2 "parallel" grid tiles for v7x's two TensorCores.
# Double-buffered in/out VMEM at this tile is < 0.5 MiB -> fits every chip.
TILE_ROWS = 8
TILE_COLS = 1024


def _mf_kernel(s_ref, user_idx_ref, item_idx_ref, out_ref, *, n_items, n_entries):
    """One batch tile.

    s_ref        : (M*N,) f32 in SMEM — precomputed score table S[u * N + i].
    user_idx_ref : (R, C) int32, batch dense on sublane + lane axes.
    item_idx_ref : (R, C) int32.
    out_ref      : (R, C) f32 — lane-dense, unmasked full-vreg stores.
    """
    uid = user_idx_ref[...]
    iid = item_idx_ref[...]
    flat = uid * n_items + iid            # flattened (user, item) pair id per element

    # Unrolled scalar-splat select-gather over the n_entries (= M*N = 30) slots.
    # Pure VPU compares/selects fed by SMEM scalar loads (scalar slots are idle
    # anyway).  Out-of-range indices match no slot and contribute 0 — same
    # behavior as the previous one-hot formulation.
    acc = jnp.zeros(out_ref.shape, dtype=jnp.float32)
    for r in range(n_entries):            # static, tiny -> unrolled at trace time
        acc = jnp.where(flat == r, s_ref[r], acc)
    out_ref[...] = acc


def matrix_factorization_forward(user, item, user_factors, item_factors, *,
                                 tile_rows=TILE_ROWS, tile_cols=TILE_COLS):
    """user, item: int [B]; user_factors: [M, K]; item_factors: [N, K] float32.
    Returns float32 [B] = rowwise dot of gathered user/item factor vectors."""
    b = user.shape[0]
    m, _ = user_factors.shape
    n, _ = item_factors.shape

    # Precompute the tiny score table S[u, i] = <U[u], V[i]> with plain f32
    # elementwise multiply + sum (identical math/precision to the reference,
    # no MXU bf16 pass), then flatten to M*N SMEM scalars.
    # TODO(synk): for realistically large factor tables this S-table does not
    # scale; keep the tables HBM-resident and DMA-gather rows via scalar
    # prefetch instead.
    s_flat = jnp.sum(
        user_factors.astype(jnp.float32)[:, None, :]
        * item_factors.astype(jnp.float32)[None, :, :],
        axis=-1,
    ).reshape(-1)                                            # (M*N,) f32

    # For small batches collapse to a single grid step with the smallest valid
    # (8, 128*k) block instead of looping 128-wide tiles.
    tile_elems = tile_rows * tile_cols
    if b <= tile_elems:
        cols_needed = pl.cdiv(b, tile_rows)
        tile_cols = max(128, pl.cdiv(cols_needed, 128) * 128)
        tile_elems = tile_rows * tile_cols

    b_pad = pl.cdiv(b, tile_elems) * tile_elems
    total_rows = b_pad // tile_cols
    grid = (total_rows // tile_rows,)

    # Sublane+lane dense 2-D index layout; single jnp.pad (index 0 is a valid
    # row, padded tail is trimmed after the kernel).
    user2d = jnp.pad(user.astype(jnp.int32), (0, b_pad - b)).reshape(total_rows, tile_cols)
    item2d = jnp.pad(item.astype(jnp.int32), (0, b_pad - b)).reshape(total_rows, tile_cols)

    kernel = functools.partial(_mf_kernel, n_items=n, n_entries=m * n)

    out = pl.pallas_call(
        kernel,
        out_shape=jax.ShapeDtypeStruct((total_rows, tile_cols), jnp.float32),
        grid=grid,
        in_specs=[
            pl.BlockSpec(memory_space=pltpu.MemorySpace.SMEM),       # S table (M*N f32 scalars)
            pl.BlockSpec((tile_rows, tile_cols), lambda i: (i, 0)),  # user indices
            pl.BlockSpec((tile_rows, tile_cols), lambda i: (i, 0)),  # item indices
        ],
        out_specs=pl.BlockSpec((tile_rows, tile_cols), lambda i: (i, 0)),
        compiler_params=pltpu.CompilerParams(
            dimension_semantics=("parallel",)),                      # batch tiles shard across cores
    )(s_flat, user2d, item2d)

    return out.reshape(-1)[:b]


if __name__ == "__main__":
    key = jax.random.PRNGKey(0)
    k_uf, k_if, k_u, k_i = jax.random.split(key, 4)

    # torch.nn.Embedding default init: N(0, 1)
    user_factors = jax.random.normal(k_uf, (M_USERS, K_FACTORS), dtype=jnp.float32)
    item_factors = jax.random.normal(k_if, (N_ITEMS, K_FACTORS), dtype=jnp.float32)

    # Small demo batch (single minimal (8,128) tile path).
    batch = 8
    user = jax.random.randint(k_u, (batch,), 0, M_USERS, dtype=jnp.int32)
    item = jax.random.randint(k_i, (batch,), 0, N_ITEMS, dtype=jnp.int32)

    result = matrix_factorization_forward(user, item, user_factors, item_factors)
    jax.block_until_ready(result)

    ref = jnp.sum(user_factors[user] * item_factors[item], axis=1)
    assert jnp.allclose(result, ref, atol=1e-5, rtol=1e-5), (result, ref)

    # Larger batch exercising the multi-tile (8, 1024) path + padding/trim.
    k_u2, k_i2 = jax.random.split(k_u, 2)
    batch2 = 10000
    user2 = jax.random.randint(k_u2, (batch2,), 0, M_USERS, dtype=jnp.int32)
    item2 = jax.random.randint(k_i2, (batch2,), 0, N_ITEMS, dtype=jnp.int32)

    result2 = matrix_factorization_forward(user2, item2, user_factors, item_factors)
    jax.block_until_ready(result2)

    ref2 = jnp.sum(user_factors[user2] * item_factors[item2], axis=1)
    assert jnp.allclose(result2, ref2, atol=1e-5, rtol=1e-5)

    print("KERNEL_OK")
</pallas_src>

<mosaic_0001>
module attributes {stable_mosaic.version = 11 : i64} {
  func.func @_mf_kernel(%arg0: i32, %arg1: memref<30xf32, #tpu.memory_space<smem>>, %arg2: memref<8x128xi32, #tpu.memory_space<vmem>>, %arg3: memref<8x128xi32, #tpu.memory_space<vmem>>, %arg4: memref<8x128xf32, #tpu.memory_space<vmem>>) attributes {dimension_semantics = [#tpu.dimension_semantics<parallel>], iteration_bounds = array<i64: 1>, scalar_prefetch = 0 : i64, scratch_operands = 0 : i64, tpu.core_type = #tpu.core_type<tc>, window_params = [{transform_indices = @transform_0, window_bounds = array<i64: 30>}, {transform_indices = @transform_1, window_bounds = array<i64: 8, 128>}, {transform_indices = @transform_2, window_bounds = array<i64: 8, 128>}, {transform_indices = @transform_3, window_bounds = array<i64: 8, 128>}]} {
    %c0 = arith.constant 0 : index
    %c0_0 = arith.constant 0 : index
    %0 = vector.load %arg2[%c0, %c0_0] : memref<8x128xi32, #tpu.memory_space<vmem>>, vector<8x128xi32>
    %c0_1 = arith.constant 0 : index
    %c0_2 = arith.constant 0 : index
    %1 = vector.load %arg3[%c0_1, %c0_2] : memref<8x128xi32, #tpu.memory_space<vmem>>, vector<8x128xi32>
    %c5_i32 = arith.constant 5 : i32
    %2 = vector.broadcast %c5_i32 : i32 to vector<8x128xi32>
    %3 = arith.muli %0, %2 : vector<8x128xi32>
    %4 = arith.addi %3, %1 : vector<8x128xi32>
    %cst = arith.constant 0.000000e+00 : f32
    %5 = vector.broadcast %cst : f32 to vector<8x128xf32>
    %c0_i32 = arith.constant 0 : i32
    %6 = vector.broadcast %c0_i32 : i32 to vector<8x128xi32>
    %7 = arith.cmpi eq, %4, %6 : vector<8x128xi32>
    %c0_3 = arith.constant 0 : index
    %8 = memref.load %arg1[%c0_3] : memref<30xf32, #tpu.memory_space<smem>>
    %9 = vector.broadcast %8 : f32 to vector<8x128xf32>
    %10 = arith.select %7, %9, %5 : vector<8x128xi1>, vector<8x128xf32>
    %c1_i32 = arith.constant 1 : i32
    %11 = vector.broadcast %c1_i32 : i32 to vector<8x128xi32>
    %12 = arith.cmpi eq, %4, %11 : vector<8x128xi32>
    %c1 = arith.constant 1 : index
    %13 = memref.load %arg1[%c1] : memref<30xf32, #tpu.memory_space<smem>>
    %14 = vector.broadcast %13 : f32 to vector<8x128xf32>
    %15 = arith.select %12, %14, %10 : vector<8x128xi1>, vector<8x128xf32>
    %c2_i32 = arith.constant 2 : i32
    %16 = vector.broadcast %c2_i32 : i32 to vector<8x128xi32>
    %17 = arith.cmpi eq, %4, %16 : vector<8x128xi32>
    %c2 = arith.constant 2 : index
    %18 = memref.load %arg1[%c2] : memref<30xf32, #tpu.memory_space<smem>>
    %19 = vector.broadcast %18 : f32 to vector<8x128xf32>
    %20 = arith.select %17, %19, %15 : vector<8x128xi1>, vector<8x128xf32>
    %c3_i32 = arith.constant 3 : i32
    %21 = vector.broadcast %c3_i32 : i32 to vector<8x128xi32>
    %22 = arith.cmpi eq, %4, %21 : vector<8x128xi32>
    %c3 = arith.constant 3 : index
    %23 = memref.load %arg1[%c3] : memref<30xf32, #tpu.memory_space<smem>>
    %24 = vector.broadcast %23 : f32 to vector<8x128xf32>
    %25 = arith.select %22, %24, %20 : vector<8x128xi1>, vector<8x128xf32>
    %c4_i32 = arith.constant 4 : i32
    %26 = vector.broadcast %c4_i32 : i32 to vector<8x128xi32>
    %27 = arith.cmpi eq, %4, %26 : vector<8x128xi32>
    %c4 = arith.constant 4 : index
    %28 = memref.load %arg1[%c4] : memref<30xf32, #tpu.memory_space<smem>>
    %29 = vector.broadcast %28 : f32 to vector<8x128xf32>
    %30 = arith.select %27, %29, %25 : vector<8x128xi1>, vector<8x128xf32>
    %c5_i32_4 = arith.constant 5 : i32
    %31 = vector.broadcast %c5_i32_4 : i32 to vector<8x128xi32>
    %32 = arith.cmpi eq, %4, %31 : vector<8x128xi32>
    %c5 = arith.constant 5 : index
    %33 = memref.load %arg1[%c5] : memref<30xf32, #tpu.memory_space<smem>>
    %34 = vector.broadcast %33 : f32 to vector<8x128xf32>
    %35 = arith.select %32, %34, %30 : vector<8x128xi1>, vector<8x128xf32>
    %c6_i32 = arith.constant 6 : i32
    %36 = vector.broadcast %c6_i32 : i32 to vector<8x128xi32>
    %37 = arith.cmpi eq, %4, %36 : vector<8x128xi32>
    %c6 = arith.constant 6 : index
    %38 = memref.load %arg1[%c6] : memref<30xf32, #tpu.memory_space<smem>>
    %39 = vector.broadcast %38 : f32 to vector<8x128xf32>
    %40 = arith.select %37, %39, %35 : vector<8x128xi1>, vector<8x128xf32>
    %c7_i32 = arith.constant 7 : i32
    %41 = vector.broadcast %c7_i32 : i32 to vector<8x128xi32>
    %42 = arith.cmpi eq, %4, %41 : vector<8x128xi32>
    %c7 = arith.constant 7 : index
    %43 = memref.load %arg1[%c7] : memref<30xf32, #tpu.memory_space<smem>>
    %44 = vector.broadcast %43 : f32 to vector<8x128xf32>
    %45 = arith.select %42, %44, %40 : vector<8x128xi1>, vector<8x128xf32>
    %c8_i32 = arith.constant 8 : i32
    %46 = vector.broadcast %c8_i32 : i32 to vector<8x128xi32>
    %47 = arith.cmpi eq, %4, %46 : vector<8x128xi32>
    %c8 = arith.constant 8 : index
    %48 = memref.load %arg1[%c8] : memref<30xf32, #tpu.memory_space<smem>>
    %49 = vector.broadcast %48 : f32 to vector<8x128xf32>
    %50 = arith.select %47, %49, %45 : vector<8x128xi1>, vector<8x128xf32>
    %c9_i32 = arith.constant 9 : i32
    %51 = vector.broadcast %c9_i32 : i32 to vector<8x128xi32>
    %52 = arith.cmpi eq, %4, %51 : vector<8x128xi32>
    %c9 = arith.constant 9 : index
    %53 = memref.load %arg1[%c9] : memref<30xf32, #tpu.memory_space<smem>>
    %54 = vector.broadcast %53 : f32 to vector<8x128xf32>
    %55 = arith.select %52, %54, %50 : vector<8x128xi1>, vector<8x128xf32>
    %c10_i32 = arith.constant 10 : i32
    %56 = vector.broadcast %c10_i32 : i32 to vector<8x128xi32>
    %57 = arith.cmpi eq, %4, %56 : vector<8x128xi32>
    %c10 = arith.constant 10 : index
    %58 = memref.load %arg1[%c10] : memref<30xf32, #tpu.memory_space<smem>>
    %59 = vector.broadcast %58 : f32 to vector<8x128xf32>
    %60 = arith.select %57, %59, %55 : vector<8x128xi1>, vector<8x128xf32>
    %c11_i32 = arith.constant 11 : i32
    %61 = vector.broadcast %c11_i32 : i32 to vector<8x128xi32>
    %62 = arith.cmpi eq, %4, %61 : vector<8x128xi32>
    %c11 = arith.constant 11 : index
    %63 = memref.load %arg1[%c11] : memref<30xf32, #tpu.memory_space<smem>>
    %64 = vector.broadcast %63 : f32 to vector<8x128xf32>
    %65 = arith.select %62, %64, %60 : vector<8x128xi1>, vector<8x128xf32>
    %c12_i32 = arith.constant 12 : i32
    %66 = vector.broadcast %c12_i32 : i32 to vector<8x128xi32>
    %67 = arith.cmpi eq, %4, %66 : vector<8x128xi32>
    %c12 = arith.constant 12 : index
    %68 = memref.load %arg1[%c12] : memref<30xf32, #tpu.memory_space<smem>>
    %69 = vector.broadcast %68 : f32 to vector<8x128xf32>
    %70 = arith.select %67, %69, %65 : vector<8x128xi1>, vector<8x128xf32>
    %c13_i32 = arith.constant 13 : i32
    %71 = vector.broadcast %c13_i32 : i32 to vector<8x128xi32>
    %72 = arith.cmpi eq, %4, %71 : vector<8x128xi32>
    %c13 = arith.constant 13 : index
    %73 = memref.load %arg1[%c13] : memref<30xf32, #tpu.memory_space<smem>>
    %74 = vector.broadcast %73 : f32 to vector<8x128xf32>
    %75 = arith.select %72, %74, %70 : vector<8x128xi1>, vector<8x128xf32>
    %c14_i32 = arith.constant 14 : i32
    %76 = vector.broadcast %c14_i32 : i32 to vector<8x128xi32>
    %77 = arith.cmpi eq, %4, %76 : vector<8x128xi32>
    %c14 = arith.constant 14 : index
    %78 = memref.load %arg1[%c14] : memref<30xf32, #tpu.memory_space<smem>>
    %79 = vector.broadcast %78 : f32 to vector<8x128xf32>
    %80 = arith.select %77, %79, %75 : vector<8x128xi1>, vector<8x128xf32>
    %c15_i32 = arith.constant 15 : i32
    %81 = vector.broadcast %c15_i32 : i32 to vector<8x128xi32>
    %82 = arith.cmpi eq, %4, %81 : vector<8x128xi32>
    %c15 = arith.constant 15 : index
    %83 = memref.load %arg1[%c15] : memref<30xf32, #tpu.memory_space<smem>>
    %84 = vector.broadcast %83 : f32 to vector<8x128xf32>
    %85 = arith.select %82, %84, %80 : vector<8x128xi1>, vector<8x128xf32>
    %c16_i32 = arith.constant 16 : i32
    %86 = vector.broadcast %c16_i32 : i32 to vector<8x128xi32>
    %87 = arith.cmpi eq, %4, %86 : vector<8x128xi32>
    %c16 = arith.constant 16 : index
    %88 = memref.load %arg1[%c16] : memref<30xf32, #tpu.memory_space<smem>>
    %89 = vector.broadcast %88 : f32 to vector<8x128xf32>
    %90 = arith.select %87, %89, %85 : vector<8x128xi1>, vector<8x128xf32>
    %c17_i32 = arith.constant 17 : i32
    %91 = vector.broadcast %c17_i32 : i32 to vector<8x128xi32>
    %92 = arith.cmpi eq, %4, %91 : vector<8x128xi32>
    %c17 = arith.constant 17 : index
    %93 = memref.load %arg1[%c17] : memref<30xf32, #tpu.memory_space<smem>>
    %94 = vector.broadcast %93 : f32 to vector<8x128xf32>
    %95 = arith.select %92, %94, %90 : vector<8x128xi1>, vector<8x128xf32>
    %c18_i32 = arith.constant 18 : i32
    %96 = vector.broadcast %c18_i32 : i32 to vector<8x128xi32>
    %97 = arith.cmpi eq, %4, %96 : vector<8x128xi32>
    %c18 = arith.constant 18 : index
    %98 = memref.load %arg1[%c18] : memref<30xf32, #tpu.memory_space<smem>>
    %99 = vector.broadcast %98 : f32 to vector<8x128xf32>
    %100 = arith.select %97, %99, %95 : vector<8x128xi1>, vector<8x128xf32>
    %c19_i32 = arith.constant 19 : i32
    %101 = vector.broadcast %c19_i32 : i32 to vector<8x128xi32>
    %102 = arith.cmpi eq, %4, %101 : vector<8x128xi32>
    %c19 = arith.constant 19 : index
    %103 = memref.load %arg1[%c19] : memref<30xf32, #tpu.memory_space<smem>>
    %104 = vector.broadcast %103 : f32 to vector<8x128xf32>
    %105 = arith.select %102, %104, %100 : vector<8x128xi1>, vector<8x128xf32>
    %c20_i32 = arith.constant 20 : i32
    %106 = vector.broadcast %c20_i32 : i32 to vector<8x128xi32>
    %107 = arith.cmpi eq, %4, %106 : vector<8x128xi32>
    %c20 = arith.constant 20 : index
    %108 = memref.load %arg1[%c20] : memref<30xf32, #tpu.memory_space<smem>>
    %109 = vector.broadcast %108 : f32 to vector<8x128xf32>
    %110 = arith.select %107, %109, %105 : vector<8x128xi1>, vector<8x128xf32>
    %c21_i32 = arith.constant 21 : i32
    %111 = vector.broadcast %c21_i32 : i32 to vector<8x128xi32>
    %112 = arith.cmpi eq, %4, %111 : vector<8x128xi32>
    %c21 = arith.constant 21 : index
    %113 = memref.load %arg1[%c21] : memref<30xf32, #tpu.memory_space<smem>>
    %114 = vector.broadcast %113 : f32 to vector<8x128xf32>
    %115 = arith.select %112, %114, %110 : vector<8x128xi1>, vector<8x128xf32>
    %c22_i32 = arith.constant 22 : i32
    %116 = vector.broadcast %c22_i32 : i32 to vector<8x128xi32>
    %117 = arith.cmpi eq, %4, %116 : vector<8x128xi32>
    %c22 = arith.constant 22 : index
    %118 = memref.load %arg1[%c22] : memref<30xf32, #tpu.memory_space<smem>>
    %119 = vector.broadcast %118 : f32 to vector<8x128xf32>
    %120 = arith.select %117, %119, %115 : vector<8x128xi1>, vector<8x128xf32>
    %c23_i32 = arith.constant 23 : i32
    %121 = vector.broadcast %c23_i32 : i32 to vector<8x128xi32>
    %122 = arith.cmpi eq, %4, %121 : vector<8x128xi32>
    %c23 = arith.constant 23 : index
    %123 = memref.load %arg1[%c23] : memref<30xf32, #tpu.memory_space<smem>>
    %124 = vector.broadcast %123 : f32 to vector<8x128xf32>
    %125 = arith.select %122, %124, %120 : vector<8x128xi1>, vector<8x128xf32>
    %c24_i32 = arith.constant 24 : i32
    %126 = vector.broadcast %c24_i32 : i32 to vector<8x128xi32>
    %127 = arith.cmpi eq, %4, %126 : vector<8x128xi32>
    %c24 = arith.constant 24 : index
    %128 = memref.load %arg1[%c24] : memref<30xf32, #tpu.memory_space<smem>>
    %129 = vector.broadcast %128 : f32 to vector<8x128xf32>
    %130 = arith.select %127, %129, %125 : vector<8x128xi1>, vector<8x128xf32>
    %c25_i32 = arith.constant 25 : i32
    %131 = vector.broadcast %c25_i32 : i32 to vector<8x128xi32>
    %132 = arith.cmpi eq, %4, %131 : vector<8x128xi32>
    %c25 = arith.constant 25 : index
    %133 = memref.load %arg1[%c25] : memref<30xf32, #tpu.memory_space<smem>>
    %134 = vector.broadcast %133 : f32 to vector<8x128xf32>
    %135 = arith.select %132, %134, %130 : vector<8x128xi1>, vector<8x128xf32>
    %c26_i32 = arith.constant 26 : i32
    %136 = vector.broadcast %c26_i32 : i32 to vector<8x128xi32>
    %137 = arith.cmpi eq, %4, %136 : vector<8x128xi32>
    %c26 = arith.constant 26 : index
    %138 = memref.load %arg1[%c26] : memref<30xf32, #tpu.memory_space<smem>>
    %139 = vector.broadcast %138 : f32 to vector<8x128xf32>
    %140 = arith.select %137, %139, %135 : vector<8x128xi1>, vector<8x128xf32>
    %c27_i32 = arith.constant 27 : i32
    %141 = vector.broadcast %c27_i32 : i32 to vector<8x128xi32>
    %142 = arith.cmpi eq, %4, %141 : vector<8x128xi32>
    %c27 = arith.constant 27 : index
    %143 = memref.load %arg1[%c27] : memref<30xf32, #tpu.memory_space<smem>>
    %144 = vector.broadcast %143 : f32 to vector<8x128xf32>
    %145 = arith.select %142, %144, %140 : vector<8x128xi1>, vector<8x128xf32>
    %c28_i32 = arith.constant 28 : i32
    %146 = vector.broadcast %c28_i32 : i32 to vector<8x128xi32>
    %147 = arith.cmpi eq, %4, %146 : vector<8x128xi32>
    %c28 = arith.constant 28 : index
    %148 = memref.load %arg1[%c28] : memref<30xf32, #tpu.memory_space<smem>>
    %149 = vector.broadcast %148 : f32 to vector<8x128xf32>
    %150 = arith.select %147, %149, %145 : vector<8x128xi1>, vector<8x128xf32>
    %c29_i32 = arith.constant 29 : i32
    %151 = vector.broadcast %c29_i32 : i32 to vector<8x128xi32>
    %152 = arith.cmpi eq, %4, %151 : vector<8x128xi32>
    %c29 = arith.constant 29 : index
    %153 = memref.load %arg1[%c29] : memref<30xf32, #tpu.memory_space<smem>>
    %154 = vector.broadcast %153 : f32 to vector<8x128xf32>
    %155 = arith.select %152, %154, %150 : vector<8x128xi1>, vector<8x128xf32>
    %c0_5 = arith.constant 0 : index
    %c0_6 = arith.constant 0 : index
    %156 = vector.load %arg4[%c0_5, %c0_6] : memref<8x128xf32, #tpu.memory_space<vmem>>, vector<8x128xf32>
    tpu.vector_store %arg4[%c0_5, %c0_6], %155 {strides = array<i32>} : memref<8x128xf32, #tpu.memory_space<vmem>>, vector<8x128xf32>,
    return
  }
  func.func @transform_0(%arg0: i32) -> i32 {
    %c0_i32 = arith.constant 0 : i32
    %c0_i32_0 = arith.constant 0 : i32
    return %c0_i32 : i32
  }
  func.func @transform_1(%arg0: i32) -> (i32, i32) {
    %c0_i32 = arith.constant 0 : i32
    %c0_i32_0 = arith.constant 0 : i32
    return %arg0, %c0_i32 : i32, i32
  }
  func.func @transform_2(%arg0: i32) -> (i32, i32) {
    %c0_i32 = arith.constant 0 : i32
    %c0_i32_0 = arith.constant 0 : i32
    return %arg0, %c0_i32 : i32, i32
  }
  func.func @transform_3(%arg0: i32) -> (i32, i32) {
    %c0_i32 = arith.constant 0 : i32
    %c0_i32_0 = arith.constant 0 : i32
    return %arg0, %c0_i32 : i32, i32
  }
}

</mosaic_0001>

<bundles_post_ra>
// kernel: tpu_custom_call.1
= control target key start
LH: loop header
LB: loop body
LE: loop exit
PB: predicated region body
PF: predicated region fallthrough
CT: control target
= control target key end

     0   :  { %8 = vsyncpa [#allocation5], 0  ;;  %s488_s0 = inlined_call_operand.hbm [shape: f32[30], index: 0, kind: input, shape index: {}]   ;;  %s489_s1 = inlined_call_operand.hbm [shape: s32[8,128], index: 1, kind: input, shape index: {}]   ;;  %s490_s2 = inlined_call_operand.hbm [shape: s32[8,128], index: 2, kind: input, shape index: {}]   ;;  %s491_s3 = inlined_call_operand.hbm [shape: f32[8,128], index: 3, kind: output, shape index: {}]  }
   0x1   :  { %9 = vsyncpa [#allocation3], 0 }
   0x2   :  { %10 = vsyncpa [#allocation8], 0 }
   0x3   :  { %11 = vsyncpa [#allocation4], 0  ;;  %s225_s14 = scalar_lea.hbm %s488_s0, 16 }
   0x4   :  { %p226_p0 = scmp.ne.s32.totalorder %s488_s0, %s225_s14  ;;  %p229_p1 = scmp.lt.u32.totalorder %s225_s14, %s488_s0 }
   0x6   :  { %p231_p2 = pnand %p229_p1, %p226_p0 }
   0x8   :  { %234 = shalt.err (!%p231_p2)
}
   0x9   :  { %s309_s19 = smov [#allocation2]   ;;  %s310_s22 = smov [#allocation6]  }
   0xa   :  { %19 = dma.hbm_to_smem %s488_s0, 16, %s309_s19, [#allocation5]  }
   0xb   :  { %s26_s23 = sshll.u32 %s310_s22, 4  ;;  %s311_s24 = smov [#allocation7]   ;;  %s27_s23 = int_to_ptr.vmem [resolvable:$true] %s26_s23 }
   0xc   :  { %s36_s25 = sshll.u32 %s311_s24, 4  ;;  %s235_s28 = scalar_lea.hbm %s489_s1, 128  ;;  %s37_s25 = int_to_ptr.vmem [resolvable:$true] %s36_s25 }
   0xd   :  { %p236_p3 = scmp.ne.s32.totalorder %s489_s1, %s235_s28  ;;  %p239_p4 = scmp.lt.u32.totalorder %s235_s28, %s489_s1 }
   0xf   :  { %p241_p5 = pnand %p239_p4, %p236_p3 }
  0x11   :  { %244 = shalt.err (!%p241_p5)
}
  0x12   :  { %s245_s0 = scalar_lea.vmem %s27_s23, 128  ;;  %p250_p7 = scmp.lt.s32.totalorder %s27_s23, %s27_s23 }
  0x13   :  { %p246_p6 = scmp.ne.s32.totalorder %s27_s23, %s245_s0  ;;  %p251_p8 = scmp.lt.s32.totalorder %s245_s0, %s245_s0 }
  0x15   :  { %p252_p9 = por %p251_p8, %p250_p7 }
  0x17   :  { %p253_p10 = pnand %p252_p9, %p246_p6 }
  0x19   :  { %256 = shalt.err (!%p253_p10)
}
  0x1a   :  { %29 = dma.hbm_to_vmem [thread:$0]  %s489_s1, 128, %s27_s23, [#allocation3]  }
  0x1b   :  { %s257_s10 = scalar_lea.hbm %s490_s2, 128 }
  0x1c   :  { %p258_p11 = scmp.ne.s32.totalorder %s490_s2, %s257_s10  ;;  %p261_p12 = scmp.lt.u32.totalorder %s257_s10, %s490_s2 }
  0x1e   :  { %p263_p13 = pnand %p261_p12, %p258_p11 }
  0x20   :  { %266 = shalt.err (!%p263_p13)
}
  0x21   :  { %s267_s15 = scalar_lea.vmem %s37_s25, 128  ;;  %p272_p1 = scmp.lt.s32.totalorder %s37_s25, %s37_s25 }
  0x22   :  { %p268_p0 = scmp.ne.s32.totalorder %s37_s25, %s267_s15  ;;  %p273_p2 = scmp.lt.s32.totalorder %s267_s15, %s267_s15 }
  0x24   :  { %p274_p3 = por %p273_p2, %p272_p1 }
  0x26   :  { %p275_p4 = pnand %p274_p3, %p268_p0 }
  0x28   :  { %278 = shalt.err (!%p275_p4)
}
  0x29   :  { %39 = dma.hbm_to_vmem [thread:$0]  %s490_s2, 128, %s37_s25, [#allocation8]  }
  0x2a   :  { %301 = dma.done.wait [#allocation5], 16  }
  0x2b   :  { %302 = vsyncadd [#allocation5], 4294967280 }
  0x2c   :  { %303 = dma.done.wait [#allocation3], 128  }
  0x2d   :  { %304 = vsyncadd [#allocation3], 4294967168 }
  0x2e   :  { %305 = dma.done.wait [#allocation8], 128  }
  0x2f   :  { %306 = vsyncadd [#allocation8], 4294967168 }
  0x30   :  { %49 = sfence }
  0x31   :  { %v50_v0 = vld [vmem:[#allocation6] sm:$0xff]  ;;  %v51_v1 = vld [vmem:[#allocation7] sm:$0xff]  ;;  %s55_s17 = sld [smem:[#allocation2]]  ;;  %s192_s18 = sld [smem:[#allocation2 + $0x1]] }
  0x32   :  { %v52_v2 = vmul.u32 5, %v50_v0  ;;  %s193_s19 = sld [smem:[#allocation2 + $0x2]]  ;;  %s194_s20 = sld [smem:[#allocation2 + $0x3]] }
  0x33   :  { %s195_s21 = sld [smem:[#allocation2 + $0x4]]  ;;  %s369_s22 = sld [smem:[#allocation2 + $0x5]] }
  0x34   :  { %v371_v3 = vadd.s32 %v52_v2, %v51_v1  ;;  %s373_s2 = sld [smem:[#allocation2 + $0x6]]  ;;  %s375_s23 = sld [smem:[#allocation2 + $0x7]] }
  0x35   :  { %s377_s24 = sld [smem:[#allocation2 + $0x8]]  ;;  %s381_s25 = sld [smem:[#allocation2 + $0x9]] }
  0x36   :  { %vm54_vm0 = vcmp.eq.s32.totalorder %v371_v3, 0  ;;  %vm58_vm1 = vcmp.eq.s32.totalorder %v371_v3, 1  ;;  %vm62_vm2 = vcmp.eq.s32.totalorder %v371_v3, 2  ;;  %s384_s26 = sld [smem:[#allocation2 + $0xa]]  ;;  %vm66_vm3 = vcmp.eq.s32.totalorder %v371_v3, 3  ;;  %s387_s27 = sld [smem:[#allocation2 + $0xb]] }
  0x37   :  { %v56_v4 = vstv %s55_s17  ;;  %v60_v5 = vstv %s192_s18  ;;  %vm70_vm4 = vcmp.eq.s32.totalorder %v371_v3, 4  ;;  %s390_s28 = sld [smem:[#allocation2 + $0xc]]  ;;  %vm74_vm5 = vcmp.eq.s32.totalorder %v371_v3, 5  ;;  %s394_s29 = sld [smem:[#allocation2 + $0xd]] }
  0x38   :  { %v57_v6 = vsel %vm54_vm0, %v56_v4, 0.0  ;;  %v64_v7 = vstv %s193_s19  ;;  %v68_v8 = vstv %s194_s20  ;;  %vm78_vm6 = vcmp.eq.s32.totalorder %v371_v3, 6  ;;  %s398_s30 = sld [smem:[#allocation2 + $0xe]]  ;;  %s402_s4 = sld [smem:[#allocation2 + $0xf]] }
  0x39   :  { %v61_v9 = vsel %vm58_vm1, %v60_v5, %v57_v6  ;;  %v72_v10 = vstv %s195_s21  ;;  %v76_v12 = vstv %s369_s22  ;;  %vm82_vm7 = vcmp.eq.s32.totalorder %v371_v3, 7  ;;  %s406_s5 = sld [smem:[#allocation2 + $0x10]]  ;;  %s410_s0 = sld [smem:[#allocation2 + $0x11]] }
  0x3a   :  { %v65_v11 = vsel %vm62_vm2, %v64_v7, %v61_v9  ;;  %v80_v14 = vstv %s373_s2  ;;  %v84_v16 = vstv %s375_s23  ;;  %vm86_vm8 = vcmp.eq.s32.totalorder %v371_v3, 8  ;;  %s414_s6 = sld [smem:[#allocation2 + $0x12]]  ;;  %s418_s7 = sld [smem:[#allocation2 + $0x13]] }
  0x3b   :  { %v69_v13 = vsel %vm66_vm3, %v68_v8, %v65_v11  ;;  %v88_v18 = vstv %s377_s24  ;;  %vm90_vm9 = vcmp.eq.s32.totalorder %v371_v3, 9  ;;  %v92_v20 = vstv %s381_s25  ;;  %s422_s8 = sld [smem:[#allocation2 + $0x14]]  ;;  %s426_s9 = sld [smem:[#allocation2 + $0x15]] }
  0x3c   :  { %v73_v15 = vsel %vm70_vm4, %v72_v10, %v69_v13  ;;  %vm94_vm10 = vcmp.eq.s32.totalorder %v371_v3, 10  ;;  %v96_v22 = vstv %s384_s26  ;;  %vm98_vm11 = vcmp.eq.s32.totalorder %v371_v3, 11  ;;  %s430_s10 = sld [smem:[#allocation2 + $0x16]]  ;;  %s434_s11 = sld [smem:[#allocation2 + $0x17]] }
  0x3d   :  { %v77_v17 = vsel %vm74_vm5, %v76_v12, %v73_v15  ;;  %v100_v24 = vstv %s387_s27  ;;  %vm102_vm12 = vcmp.eq.s32.totalorder %v371_v3, 12  ;;  %v104_v26 = vstv %s390_s28  ;;  %s438_s12 = sld [smem:[#allocation2 + $0x18]]  ;;  %s442_s13 = sld [smem:[#allocation2 + $0x19]] }
  0x3e   :  { %v81_v19 = vsel %vm78_vm6, %v80_v14, %v77_v17  ;;  %vm106_vm13 = vcmp.eq.s32.totalorder %v371_v3, 13  ;;  %v108_v28 = vstv %s394_s29  ;;  %vm110_vm14 = vcmp.eq.s32.totalorder %v371_v3, 14  ;;  %s446_s14 = sld [smem:[#allocation2 + $0x1a]]  ;;  %s450_s15 = sld [smem:[#allocation2 + $0x1b]] }
  0x3f   :  { %v85_v21 = vsel %vm82_vm7, %v84_v16, %v81_v19  ;;  %v112_v30 = vstv %s398_s30  ;;  %vm114_vm15 = vcmp.eq.s32.totalorder %v371_v3, 15  ;;  %v116_v32 = vstv %s402_s4  ;;  %s454_s1 = sld [smem:[#allocation2 + $0x1c]]  ;;  %s458_s16 = sld [smem:[#allocation2 + $0x1d]] }
  0x40   :  { %v89_v23 = vsel %vm86_vm8, %v88_v18, %v85_v21  ;;  %vm118_vm0 = vcmp.eq.s32.totalorder %v371_v3, 16  ;;  %v120_v34 = vstv %s406_s5  ;;  %vm122_vm1 = vcmp.eq.s32.totalorder %v371_v3, 17  ;;  %s312_s17 = smov [#allocation9]  }
  0x41   :  { %v93_v25 = vsel %vm90_vm9, %v92_v20, %v89_v23  ;;  %v124_v36 = vstv %s410_s0  ;;  %vm126_vm2 = vcmp.eq.s32.totalorder %v371_v3, 18  ;;  %v128_v38 = vstv %s414_s6  ;;  %s181_s18 = sshll.u32 %s312_s17, 4  ;;  %s182_s18 = int_to_ptr.vmem [resolvable:$true] %s181_s18 }
  0x42   :  { %v97_v27 = vsel %vm94_vm10, %v96_v22, %v93_v25  ;;  %vm130_vm3 = vcmp.eq.s32.totalorder %v371_v3, 19  ;;  %v132_v40 = vstv %s418_s7  ;;  %vm134_vm4 = vcmp.eq.s32.totalorder %v371_v3, 20  ;;  %s279_s19 = scalar_lea.vmem %s182_s18, 128  ;;  %p284_p6 = scmp.lt.s32.totalorder %s182_s18, %s182_s18 }
  0x43   :  { %v101_v29 = vsel %vm98_vm11, %v100_v24, %v97_v27  ;;  %v136_v42 = vstv %s422_s8  ;;  %vm138_vm5 = vcmp.eq.s32.totalorder %v371_v3, 21  ;;  %v140_v44 = vstv %s426_s9  ;;  %p280_p5 = scmp.ne.s32.totalorder %s182_s18, %s279_s19  ;;  %p285_p7 = scmp.lt.s32.totalorder %s279_s19, %s279_s19 }
  0x44   :  { %v105_v31 = vsel %vm102_vm12, %v104_v26, %v101_v29  ;;  %vm142_vm6 = vcmp.eq.s32.totalorder %v371_v3, 22  ;;  %v144_v46 = vstv %s430_s10  ;;  %vm146_vm7 = vcmp.eq.s32.totalorder %v371_v3, 23 }
  0x45   :  { %v109_v33 = vsel %vm106_vm13, %v108_v28, %v105_v31  ;;  %v148_v48 = vstv %s434_s11  ;;  %vm150_vm8 = vcmp.eq.s32.totalorder %v371_v3, 24  ;;  %v152_v50 = vstv %s438_s12  ;;  %p286_p8 = por %p285_p7, %p284_p6 }
  0x46   :  { %v113_v35 = vsel %vm110_vm14, %v112_v30, %v109_v33  ;;  %vm154_vm9 = vcmp.eq.s32.totalorder %v371_v3, 25  ;;  %v156_v52 = vstv %s442_s13  ;;  %vm158_vm10 = vcmp.eq.s32.totalorder %v371_v3, 26 }
  0x47   :  { %v117_v37 = vsel %vm114_vm15, %v116_v32, %v113_v35  ;;  %v160_v54 = vstv %s446_s14  ;;  %vm162_vm11 = vcmp.eq.s32.totalorder %v371_v3, 27  ;;  %v164_v56 = vstv %s450_s15  ;;  %p287_p9 = pnand %p286_p8, %p280_p5 }
  0x48   :  { %v121_v39 = vsel %vm118_vm0, %v120_v34, %v117_v37  ;;  %vm166_vm12 = vcmp.eq.s32.totalorder %v371_v3, 28  ;;  %v168_v58 = vstv %s454_s1  ;;  %vm170_vm13 = vcmp.eq.s32.totalorder %v371_v3, 29 }
  0x49   :  { %v125_v41 = vsel %vm122_vm1, %v124_v36, %v121_v39  ;;  %v172_v60 = vstv %s458_s16 }
  0x4a   :  { %v129_v43 = vsel %vm126_vm2, %v128_v38, %v125_v41 }
  0x4b   :  { %v133_v45 = vsel %vm130_vm3, %v132_v40, %v129_v43 }
  0x4c   :  { %v137_v47 = vsel %vm134_vm4, %v136_v42, %v133_v45 }
  0x4d   :  { %v141_v49 = vsel %vm138_vm5, %v140_v44, %v137_v47 }
  0x4e   :  { %v145_v51 = vsel %vm142_vm6, %v144_v46, %v141_v49 }
  0x4f   :  { %v149_v53 = vsel %vm146_vm7, %v148_v48, %v145_v51 }
  0x50   :  { %v153_v55 = vsel %vm150_vm8, %v152_v50, %v149_v53 }
  0x51   :  { %v157_v57 = vsel %vm154_vm9, %v156_v52, %v153_v55 }
  0x52   :  { %v161_v59 = vsel %vm158_vm10, %v160_v54, %v157_v57 }
  0x53   :  { %v165_v61 = vsel %vm162_vm11, %v164_v56, %v161_v59 }
  0x54   :  { %v169_v62 = vsel %vm166_vm12, %v168_v58, %v165_v61 }
  0x55   :  { %v173_v63 = vsel %vm170_vm13, %v172_v60, %v169_v62 }
  0x56   :  { %174 = vst [vmem:[#allocation9] sm:$0xff] %v173_v63 }
  0x57   :  { %290 = shalt.err (!%p287_p9)
}
  0x58   :  { %s291_s22 = scalar_lea.hbm %s491_s3, 128 }
  0x59   :  { %p292_p10 = scmp.ne.s32.totalorder %s491_s3, %s291_s22  ;;  %p295_p11 = scmp.lt.u32.totalorder %s291_s22, %s491_s3 }
  0x5b   :  { %p297_p12 = pnand %p295_p11, %p292_p10 }
  0x5d   :  { %300 = shalt.err (!%p297_p12)
}
  0x5e   :  { %184 = dma.vmem_to_hbm [thread:$0]  %s182_s18, 128, %s491_s3, [#allocation4]  }
  0x5f   :  { %307 = dma.done.wait [#allocation4], 128  }
  0x60   :  { %308 = vsyncadd [#allocation4], 4294967168 }
  0x61   :  { %188 = vsyncpa [#allocation3], 1 }
  0x62   :  { %189 = vsyncpa [#allocation8], 1 }
  0x63   :  { %190 = vsyncpa [#allocation4], 1 }
  0x64   :  { %191 = vsyncpa [#allocation5], 1 }

</bundles_post_ra>
